<compile_context>
chip_gen: v6e
topology: v6e:2x2x1
jax: 0.10.0
libtpu: 0.0.40
codegen_flags: <defaults>
</compile_context>

<pallas_src>
import functools

import jax
import jax.numpy as jnp
from jax.experimental import pallas as pl
from jax.experimental.pallas import tpu as pltpu


def _layernorm_channel_kernel(x_ref, w_ref, b_ref, o_ref, *, eps, inv_c):
    # x_ref : (1, C, TN)   w_ref / b_ref : (1, C, 1) f32   o_ref : (1, C, TN)
    x = x_ref[...].astype(jnp.float32)
    # Two-pass statistics over the channel (sublane) axis, matching the
    # PyTorch reference: u = mean(x), s = mean((x - u)^2).
    mean = jnp.sum(x, axis=1, keepdims=True) * inv_c          # (1, 1, TN)
    d = x - mean
    var = jnp.sum(d * d, axis=1, keepdims=True) * inv_c       # (1, 1, TN)
    rstd = jax.lax.rsqrt(var + eps)                           # EUP slot
    x_hat = d * rstd
    if o_ref.dtype == jnp.bfloat16:
        # Final affine in bf16 (bf16 VALU on v6e/v7x); (1, C, 1) casts are tiny.
        o_ref[...] = (w_ref[...].astype(jnp.bfloat16) * x_hat.astype(jnp.bfloat16)
                      + b_ref[...].astype(jnp.bfloat16))
    else:
        o_ref[...] = (w_ref[...] * x_hat + b_ref[...]).astype(o_ref.dtype)


def _vmem_budgets():
    """(tile-picker budget, vmem_limit_bytes) sized per TPU generation."""
    cap = 128 * 1024 * 1024
    try:
        info = pltpu.get_tpu_info()
        cap = int(getattr(info, "vmem_capacity_bytes", cap))
    except Exception:
        pass
    if cap <= 64 * 1024 * 1024:
        # v7x: 64 MiB VMEM per TensorCore — leave headroom for Mosaic scratch.
        return 32 * 1024 * 1024, 48 * 1024 * 1024
    # v5e / v6e: 128 MiB physical VMEM.
    return 48 * 1024 * 1024, 64 * 1024 * 1024


def _pick_tile_n(C, N, x_dtype, vmem_budget_bytes):
    """Largest lane-multiple spatial tile that fits the VMEM budget."""
    itemsize = jnp.dtype(x_dtype).itemsize
    sublane = max(8, 32 // max(itemsize, 1))        # 8 f32 / 16 bf16 / 32 int8
    c_pad = pl.cdiv(C, sublane) * sublane           # VMEM pads C to the sublane tile
    n_full = pl.cdiv(N, 128) * 128
    # Per lane-column: double-buffered input + output tiles in x.dtype plus
    # ~3 f32 working copies of the tile inside the kernel body.
    bytes_per_lane_col = c_pad * (2 * 2 * itemsize + 3 * 4)
    # Resident (1, C, 1) f32 weight/bias buffers (double-buffered, vreg-padded).
    resident = 2 * 2 * c_pad * 128 * 4
    budget = max(vmem_budget_bytes - resident, 128 * bytes_per_lane_col)
    max_tn = max(128, (budget // bytes_per_lane_col) // 128 * 128)
    return int(min(n_full, max_tn, 32768))


def layernorm_channel(x, weight, bias, eps=1e-5):
    """x: [B, C, *spatial]; weight, bias: [C]. Returns same shape/dtype as x."""
    B, C = x.shape[0], x.shape[1]
    spatial = x.shape[2:]
    N = 1
    for s in spatial:
        N *= int(s)
    x_flat = x.reshape(B, C, N)

    picker_budget, vmem_limit = _vmem_budgets()
    TN = _pick_tile_n(C, N, x.dtype, picker_budget)

    # v7x megacore occupancy: when B == 1, make sure there are >= 2 grid steps
    # so both TensorCores get work (also restores DMA/compute overlap).
    if B == 1 and N > 128:
        while pl.cdiv(N, TN) < 2 and TN > 128:
            TN = max(128, pl.cdiv(TN // 2, 128) * 128)

    n_tiles = pl.cdiv(N, TN)

    # Keep params in f32 (stats are f32); casts happen only at the final store.
    w = weight.reshape(1, C, 1).astype(jnp.float32)
    b = bias.reshape(1, C, 1).astype(jnp.float32)

    kernel = functools.partial(
        _layernorm_channel_kernel, eps=float(eps), inv_c=1.0 / float(C))

    out_flat = pl.pallas_call(
        kernel,
        out_shape=jax.ShapeDtypeStruct((B, C, N), x.dtype),
        grid_spec=pltpu.PrefetchScalarGridSpec(
            num_scalar_prefetch=0,
            grid=(B, n_tiles),
            in_specs=[
                pl.BlockSpec((1, C, TN), lambda bi, ni: (bi, 0, ni)),  # x tile
                pl.BlockSpec((1, C, 1), lambda bi, ni: (0, 0, 0)),     # weight (resident)
                pl.BlockSpec((1, C, 1), lambda bi, ni: (0, 0, 0)),     # bias   (resident)
            ],
            out_specs=pl.BlockSpec((1, C, TN), lambda bi, ni: (bi, 0, ni)),
        ),
        compiler_params=pltpu.CompilerParams(
            dimension_semantics=("parallel", "parallel"),
            vmem_limit_bytes=vmem_limit,
        ),
    )(x_flat, w, b)

    return out_flat.reshape(x.shape)


def layernorm_channel_ref(x, weight, bias, eps=1e-5):
    xf = x.astype(jnp.float32)
    u = jnp.mean(xf, axis=1, keepdims=True)
    s = jnp.mean((xf - u) ** 2, axis=1, keepdims=True)
    x_hat = (xf - u) / jnp.sqrt(s + eps)
    shape = (1, -1) + (1,) * (x.ndim - 2)
    w = weight.reshape(shape).astype(jnp.float32)
    b = bias.reshape(shape).astype(jnp.float32)
    return (w * x_hat + b).astype(x.dtype)


if __name__ == "__main__":
    key = jax.random.PRNGKey(0)
    k1, k2, k3 = jax.random.split(key, 3)

    # --- Test 1: f32, spatial divisible by the lane tile (no ragged block) ---
    B, C, D, H, W = 2, 4, 8, 8, 8
    x = jax.random.normal(k1, (B, C, D, H, W), dtype=jnp.float32)
    weight = jnp.ones((C,), dtype=jnp.float32) + 0.1 * jnp.arange(C, dtype=jnp.float32)
    bias = jnp.zeros((C,), dtype=jnp.float32) + 0.01 * jnp.arange(C, dtype=jnp.float32)

    out = jax.block_until_ready(layernorm_channel(x, weight, bias))
    ref = layernorm_channel_ref(x, weight, bias)
    assert out.shape == x.shape and out.dtype == x.dtype
    assert jnp.allclose(out, ref, atol=1e-4, rtol=1e-4), "mismatch (f32, even N)"

    # --- Test 2: f32, ragged last block (N = 5*7*9 = 315, not a 128 multiple),
    #     channel count not a sublane multiple ---
    B2, C2 = 2, 5
    x2 = jax.random.normal(k2, (B2, C2, 5, 7, 9), dtype=jnp.float32) * 2.0 + 3.0
    w2 = jnp.ones((C2,), dtype=jnp.float32) + 0.05 * jnp.arange(C2, dtype=jnp.float32)
    b2 = 0.02 * jnp.arange(C2, dtype=jnp.float32)

    out2 = jax.block_until_ready(layernorm_channel(x2, w2, b2))
    ref2 = layernorm_channel_ref(x2, w2, b2)
    assert jnp.allclose(out2, ref2, atol=1e-4, rtol=1e-4), "mismatch (f32, ragged N)"

    # --- Test 3: bf16, B == 1 (exercises the TN-shrink / megacore path and the
    #     bf16 final-affine branch) ---
    B3, C3 = 1, 8
    x3 = jax.random.normal(k3, (B3, C3, 4, 8, 8), dtype=jnp.float32).astype(jnp.bfloat16)
    w3 = (jnp.ones((C3,), dtype=jnp.float32) + 0.1 * jnp.arange(C3, dtype=jnp.float32))
    b3 = 0.01 * jnp.arange(C3, dtype=jnp.float32)

    out3 = jax.block_until_ready(layernorm_channel(x3, w3, b3))
    ref3 = layernorm_channel_ref(x3, w3, b3)
    assert out3.dtype == jnp.bfloat16
    assert jnp.allclose(out3.astype(jnp.float32), ref3.astype(jnp.float32),
                        atol=1e-1, rtol=5e-2), "mismatch (bf16)"

    print("KERNEL_OK")
</pallas_src>

<mosaic_0001>
module attributes {stable_mosaic.version = 11 : i64} {
  func.func @_layernorm_channel_kernel(%arg0: i32, %arg1: i32, %arg2: memref<1x4x512xf32, #tpu.memory_space<vmem>>, %arg3: memref<1x4x1xf32, #tpu.memory_space<vmem>>, %arg4: memref<1x4x1xf32, #tpu.memory_space<vmem>>, %arg5: memref<1x4x512xf32, #tpu.memory_space<vmem>>) attributes {dimension_semantics = [#tpu.dimension_semantics<parallel>, #tpu.dimension_semantics<parallel>], iteration_bounds = array<i64: 2, 1>, scalar_prefetch = 0 : i64, scratch_operands = 0 : i64, tpu.core_type = #tpu.core_type<tc>, window_params = [{transform_indices = @transform_0, window_bounds = array<i64: 1, 4, 512>}, {pipeline_mode = #tpu.pipeline_mode<synchronous>, transform_indices = @transform_1, window_bounds = array<i64: 1, 4, 1>}, {pipeline_mode = #tpu.pipeline_mode<synchronous>, transform_indices = @transform_2, window_bounds = array<i64: 1, 4, 1>}, {transform_indices = @transform_3, window_bounds = array<i64: 1, 4, 512>}]} {
    %c0 = arith.constant 0 : index
    %c0_0 = arith.constant 0 : index
    %c0_1 = arith.constant 0 : index
    %0 = vector.load %arg2[%c0, %c0_0, %c0_1] : memref<1x4x512xf32, #tpu.memory_space<vmem>>, vector<1x4x512xf32>
    %cst = arith.constant dense<0.000000e+00> : vector<1x512xf32>
    %1 = vector.multi_reduction <add>, %0, %cst [1] : vector<1x4x512xf32> to vector<1x512xf32>
    %2 = vector.shape_cast %1 : vector<1x512xf32> to vector<1x1x512xf32>
    %cst_2 = arith.constant 2.500000e-01 : f32
    %3 = vector.broadcast %cst_2 : f32 to vector<1x1x512xf32>
    %4 = arith.mulf %2, %3 : vector<1x1x512xf32>
    %5 = vector.broadcast %4 : vector<1x1x512xf32> to vector<1x4x512xf32>
    %6 = arith.subf %0, %5 : vector<1x4x512xf32>
    %7 = arith.mulf %6, %6 : vector<1x4x512xf32>
    %cst_3 = arith.constant dense<0.000000e+00> : vector<1x512xf32>
    %8 = vector.multi_reduction <add>, %7, %cst_3 [1] : vector<1x4x512xf32> to vector<1x512xf32>
    %9 = vector.shape_cast %8 : vector<1x512xf32> to vector<1x1x512xf32>
    %cst_4 = arith.constant 2.500000e-01 : f32
    %10 = vector.broadcast %cst_4 : f32 to vector<1x1x512xf32>
    %11 = arith.mulf %9, %10 : vector<1x1x512xf32>
    %cst_5 = arith.constant 9.99999974E-6 : f32
    %12 = vector.broadcast %cst_5 : f32 to vector<1x1x512xf32>
    %13 = arith.addf %11, %12 : vector<1x1x512xf32>
    %14 = math.rsqrt %13 : vector<1x1x512xf32>
    %15 = vector.broadcast %14 : vector<1x1x512xf32> to vector<1x4x512xf32>
    %16 = arith.mulf %6, %15 : vector<1x4x512xf32>
    %c0_6 = arith.constant 0 : index
    %c0_7 = arith.constant 0 : index
    %c0_8 = arith.constant 0 : index
    %17 = vector.load %arg3[%c0_6, %c0_7, %c0_8] : memref<1x4x1xf32, #tpu.memory_space<vmem>>, vector<1x4x1xf32>
    %18 = vector.broadcast %17 : vector<1x4x1xf32> to vector<1x4x512xf32>
    %19 = arith.mulf %18, %16 : vector<1x4x512xf32>
    %c0_9 = arith.constant 0 : index
    %c0_10 = arith.constant 0 : index
    %c0_11 = arith.constant 0 : index
    %20 = vector.load %arg4[%c0_9, %c0_10, %c0_11] : memref<1x4x1xf32, #tpu.memory_space<vmem>>, vector<1x4x1xf32>
    %21 = vector.broadcast %20 : vector<1x4x1xf32> to vector<1x4x512xf32>
    %22 = arith.addf %19, %21 : vector<1x4x512xf32>
    %c0_12 = arith.constant 0 : index
    %c0_13 = arith.constant 0 : index
    %c0_14 = arith.constant 0 : index
    %23 = vector.load %arg5[%c0_12, %c0_13, %c0_14] : memref<1x4x512xf32, #tpu.memory_space<vmem>>, vector<1x4x512xf32>
    tpu.vector_store %arg5[%c0_12, %c0_13, %c0_14], %22 {strides = array<i32>} : memref<1x4x512xf32, #tpu.memory_space<vmem>>, vector<1x4x512xf32>,
    return
  }
  func.func @transform_0(%arg0: i32, %arg1: i32) -> (i32, i32, i32) {
    %c0_i32 = arith.constant 0 : i32
    %c0_i32_0 = arith.constant 0 : i32
    return %arg0, %c0_i32, %arg1 : i32, i32, i32
  }
  func.func @transform_1(%arg0: i32, %arg1: i32) -> (i32, i32, i32) {
    %c0_i32 = arith.constant 0 : i32
    %c0_i32_0 = arith.constant 0 : i32
    %c0_i32_1 = arith.constant 0 : i32
    %c0_i32_2 = arith.constant 0 : i32
    return %c0_i32, %c0_i32_0, %c0_i32_1 : i32, i32, i32
  }
  func.func @transform_2(%arg0: i32, %arg1: i32) -> (i32, i32, i32) {
    %c0_i32 = arith.constant 0 : i32
    %c0_i32_0 = arith.constant 0 : i32
    %c0_i32_1 = arith.constant 0 : i32
    %c0_i32_2 = arith.constant 0 : i32
    return %c0_i32, %c0_i32_0, %c0_i32_1 : i32, i32, i32
  }
  func.func @transform_3(%arg0: i32, %arg1: i32) -> (i32, i32, i32) {
    %c0_i32 = arith.constant 0 : i32
    %c0_i32_0 = arith.constant 0 : i32
    return %arg0, %c0_i32, %arg1 : i32, i32, i32
  }
}

</mosaic_0001>

<bundles_post_ra>
// kernel: tpu_custom_call.1
= control target key start
LH: loop header
LB: loop body
LE: loop exit
PB: predicated region body
PF: predicated region fallthrough
CT: control target
= control target key end

     0   :  { %8 = vsyncpa [#allocation3], 0  ;;  %s835_s0 = inlined_call_operand.hbm [shape: f32[2,4,512], index: 0, kind: input, shape index: {}]   ;;  %s836_s1 = inlined_call_operand.vmem [shape: f32[1,4,1], index: 1, kind: input, shape index: {}]   ;;  %s837_s2 = inlined_call_operand.vmem [shape: f32[1,4,1], index: 2, kind: input, shape index: {}]   ;;  %s838_s3 = inlined_call_operand.hbm [shape: f32[2,4,512], index: 3, kind: output, shape index: {}]  }
   0x1   :  { %10 = vsyncpa [#allocation3 + $0x1], 0 }
   0x2   :  { %11 = vsyncpa [#allocation4], 0 }
   0x3   :  { %13 = vsyncpa [#allocation4 + $0x1], 0  ;;  %s677_s12 = smov 0   ;;  %s679_s13 = smov 0  }
   0x4   :  { %s681_s14 = smov 0   ;;  %s683_s15 = smov 0  }
   0x5   :  { %s685_s16 = smov 0   ;;  %s687_s17 = smov 0  }
   0x6 LB: > { %s453_s18 = sadd.s32 4294967295, %s652_s17   ;;  %s454_s19 = sadd.s32 4294967294, %s652_s17   ;;  %s652_s17 = sphi %s687_s17, %s19_s17   ;;  %s648_s16 = sphi %s685_s16, %s850_s16   ;;  %s644_s15 = sphi %s683_s15, %s849_s15   ;;  %s640_s14 = sphi %s681_s14, %s848_s14   ;;  %s636_s13 = sphi %s679_s13, %s847_s13   ;;  %s632_s12 = sphi %s677_s12, %s846_s12  }
   0x7   : > { %s31_s20 = sadd.s32 1, %s648_s16  ;;  %s40_s21 = sadd.s32 1, %s640_s14 }
   0x8   : > { %p33_p0 = scmp.ge.s32.totalorder %s31_s20, 2  ;;  %p47_p1 = scmp.ne.s32.totalorder %s640_s14, %s636_s13 }
   0x9   : > { %p48_p2 = scmp.eq.s32.totalorder %s652_s17, 0  ;;  %p53_p3 = scmp.ne.s32.totalorder %s636_s13, %s632_s12 }
   0xa   : > { %s852_s20 = smov (%p33_p0, %s31_s20), 0  ;;  %p54_p5 = scmp.eq.s32.totalorder %s453_s18, 0 }
   0xb   : > { %p718_p4 = por %p48_p2, %p47_p1  ;;  %s35_s23 = ssub.s32 %s648_s16, %s852_s20 }
   0xc   : > { %p121_p6 = scmp.eq.s32.totalorder %s453_s18, 1  ;;  %p38_p7 = scmp.eq.s32.totalorder %s35_s23, 0 }
   0xd   : > { %p724_p8 = por %p54_p5, %p53_p3  ;;  %p127_p10 = scmp.eq.s32.totalorder %s454_s19, 1 }
   0xe   : > { %p728_p9 = por %p121_p6, %p47_p1  ;;  %p482_p13 = scmp.lt.s32.totalorder %s652_s17, 2 }
   0xf   : > { %s733_s26 = scalar_select %p38_p7, %s640_s14, %s40_s21  }
  0x10   : > { %p735_p11 = por %p127_p10, %p53_p3  ;;  %s153_s28 = sand.u32 1, %s640_s14  }
  0x11   : > { %s457_s29 = sshll.u32 %s153_s28, 4  ;;  %s468_s30 = sshll.u32 %s648_s16, 8 }
  0x12   : > { %s842_s27 = scalar_select %p735_p11, 1, 0 }
  0x13   : > { %s165_s6 = scalar_lea.hbm %s835_s0, %s468_s30  ;;  %s157_s7 = scalar_lea.vmem [#allocation2], %s457_s29 }
  0x14   : > { %s167_s8 = sshll.u32 %s157_s7, 4  ;;  %p748_p0 = pnand %p482_p13, %p718_p4  ;;  %s168_s8 = int_to_ptr.vmem [resolvable:$true] %s167_s8 }
  0x15   : > { %p460_p1 = scmp.ge.s32.totalorder %s652_s17, 1  ;;  %p172_p2 = scmp.lt.s32.totalorder %s652_s17, 3 }
  0x16   : > { %s154_s10 = scalar_lea.sflag [#allocation3], %s153_s28  ;;  %p546_p3 = pneg %p748_p0 }
  0x17   : > { %s557_s11 = scalar_lea.vmem %s168_s8, 256  ;;  %s654_s18 = smov [#allocation2]  }
  0x18   : > { %p558_p5 = scmp.ne.s32.totalorder %s168_s8, %s557_s11  ;;  %s562_s19 = sshll.u32 %s654_s18, 4  ;;  %s563_s19 = int_to_ptr.vmem [resolvable:$false] %s562_s19 }
  0x19   : > { %s564_s21 = scalar_lea.vmem %s563_s19, 512  ;;  %p565_p10 = scmp.lt.s32.totalorder %s168_s8, %s563_s19 }
  0x1a   : > { %p560_p6 = pnand %p558_p5, %p546_p3  ;;  %p566_p12 = scmp.lt.s32.totalorder %s564_s21, %s557_s11 }
  0x1c   : > { %p561_p7 = pneg %p560_p6  ;;  %p567_p4 = por %p566_p12, %p565_p10 }
  0x1e   : > { %p568_p13 = pnand %p567_p4, %p561_p7 }
  0x20   : > { %571 = shalt.err (!%p568_p13)
}
  0x21   : > { %477 = dma.hbm_to_vmem [thread:$0]  (!%p748_p0), %s165_s6, 256, %s168_s8, %s154_s10  }
  0x22   : > { %p173_p11 = pnand %p460_p1, %p172_p2 }
  0x23   : > { %s763_s22 = sand.u32 (!%p173_p11), 1, %s636_s13  }
  0x24   : > { %176 = sbr.rel (%p173_p11) target bundleno = 189 (0xbd), region = 32  ;;  %s461_s23 = sshll.u32 (!%p173_p11), %s763_s22, 4 }
  0x25   : > { %s179_s28 = scalar_lea.sflag (!%p173_p11), [#allocation3], %s763_s22  ;;  %s182_s29 = scalar_lea.vmem (!%p173_p11), [#allocation2], %s461_s23 }
  0x29   : > { %623 = dma.done.wait (%p724_p8), %s179_s28, 256  }
  0x2a   : > { %625 = vsyncadd (%p724_p8), %s179_s28, 4294967040  ;;  %v655_v0 = vmov 0   ;;  %v316_v1 = vld [vmem:[%s836_s1] sm:$0xf]  ;;  %v208_v4 = vld [vmem:[%s182_s29 + $0x8] sm:$0xff]  ;;  %vm215_vm0 = vcmask 1043456  }
  0x2b   : > { %533 = vset.pattern.permute.xlu0 %v655_v0  ;;  %v332_v2 = vld [vmem:[%s837_s2] sm:$0xf]  ;;  %v212_v6 = vcombine.high %v208_v4, %v208_v4  ;;  %v230_v9 = vsel %vm215_vm0, %v208_v4, 0.0  ;;  %s469_s24 = sshll.u32 %s644_s15, 8  ;;  %s204_s7 = scalar_lea.vmem [#allocation5], %s461_s23 }
  0x2c   : > { %319 = vperm.xlu0 %533, %v316_v1   ;;  %v207_v3 = vld [vmem:[%s182_s29] sm:$0xff]  ;;  %v231_v13 = vrot.slane %v230_v9, 4  ;;  %s369_s8 = sshll.u32 %s204_s7, 4  ;;  %s793_s11 = scalar_lea.hbm %s838_s3, %s469_s24  ;;  %s370_s8 = int_to_ptr.vmem [resolvable:$true] %s369_s8 }
  0x2d   : > { %v211_v5 = vcombine.high %v207_v3, %v207_v3  ;;  %v216_v7 = vsel %vm215_vm0, %v207_v3, 0.0  ;;  %v237_v10 = vsel %vm215_vm0, %v212_v6, 0.0  ;;  %s353_s18 = scalar_lea.sflag [#allocation4], %s763_s22  ;;  %s572_s15 = scalar_lea.vmem %s370_s8, 256 }
  0x2e   : > { %v217_v11 = vrot.slane %v216_v7, 4  ;;  %v238_v14 = vrot.slane %v237_v10, 4  ;;  %v232_v17 = vadd.f32 %v231_v13, %v230_v9  ;;  %p573_p8 = scmp.ne.s32.totalorder %s370_s8, %s572_s15  ;;  %s656_s19 = smov [#allocation5]  }
  0x2f   : > { %v223_v8 = vsel %vm215_vm0, %v211_v5, 0.0  ;;  %s576_s21 = sshll.u32 %s656_s19, 4  ;;  %s577_s21 = int_to_ptr.vmem [resolvable:$false] %s576_s21 }
  0x30   : > { %335 = vperm.xlu0 %533, %v332_v2   ;;  %v224_v12 = vrot.slane %v223_v8, 4  ;;  %v218_v15 = vadd.f32 %v217_v11, %v216_v7  ;;  %v239_v18 = vadd.f32 %v238_v14, %v237_v10  ;;  %v233_v21 = vrot.slane %v232_v17, 2  ;;  %p574_p11 = pnand %p573_p8, %p728_p9  ;;  %s578_s23 = scalar_lea.vmem %s577_s21, 512 }
  0x31   : > { %p579_p0 = scmp.lt.s32.totalorder %s370_s8, %s577_s21  ;;  %p580_p1 = scmp.lt.s32.totalorder %s578_s23, %s572_s15 }
  0x32   : > { %v225_v16 = vadd.f32 %v224_v12, %v223_v8  ;;  %v219_v19 = vrot.slane %v218_v15, 2  ;;  %v240_v22 = vrot.slane %v239_v18, 2  ;;  %v234_v25 = vadd.f32 %v233_v21, %v232_v17  ;;  %p575_p12 = pneg %p574_p11 }
  0x33   : > { %p581_p2 = por %p580_p1, %p579_p0 }
  0x34   : > { %v226_v20 = vrot.slane %v225_v16, 2  ;;  %v220_v23 = vadd.f32 %v219_v19, %v218_v15  ;;  %v241_v26 = vadd.f32 %v240_v22, %v239_v18  ;;  %v235_v29 = vrot.slane %v234_v25, 1 }
  0x35   : > { %p582_p3 = pnand %p581_p2, %p575_p12 }
  0x36   : > { %v227_v24 = vadd.f32 %v226_v20, %v225_v16  ;;  %v221_v27 = vrot.slane %v220_v23, 1  ;;  %v242_v30 = vrot.slane %v241_v26, 1  ;;  %v236_v33 = vadd.f32 %v235_v29, %v234_v25 }
  0x38   : > { %v228_v28 = vrot.slane %v227_v24, 1  ;;  %v222_v31 = vadd.f32 %v221_v27, %v220_v23  ;;  %v243_v34 = vadd.f32 %v242_v30, %v241_v26  ;;  %v246_v37 = vmul.f32 0.25, %v236_v33 }
  0x3a   : > { %v229_v32 = vadd.f32 %v228_v28, %v227_v24  ;;  %v244_v35 = vmul.f32 0.25, %v222_v31  ;;  %v247_v38 = vmul.f32 0.25, %v243_v34 }
  0x3c   : > { %v245_v36 = vmul.f32 0.25, %v229_v32  ;;  %v253_v40 = vcombine.low %v246_v37, %v247_v38 }
  0x3e   : > { %v252_v39 = vcombine.low %v244_v35, %v245_v36  ;;  %v257_v42 = vsub.f32 %v208_v4, %v253_v40 }
  0x40   : > { %v256_v41 = vsub.f32 %v207_v3, %v252_v39  ;;  %v259_v44 = vmul.f32 %v257_v42, %v257_v42 }
  0x42   : > { %v258_v43 = vmul.f32 %v256_v41, %v256_v41  ;;  %v263_v46 = vcombine.high %v259_v44, %v259_v44  ;;  %v280_v48 = vsel %vm215_vm0, %v259_v44, 0.0 }
  0x43   : > { %v281_v52 = vrot.slane %v280_v48, 4 }
  0x44   : > { %v262_v45 = vcombine.high %v258_v43, %v258_v43  ;;  %v266_v47 = vsel %vm215_vm0, %v258_v43, 0.0  ;;  %v287_v51 = vsel %vm215_vm0, %v263_v46, 0.0 }
  0x45   : > { %v267_v50 = vrot.slane %v266_v47, 4  ;;  %v288_v54 = vrot.slane %v287_v51, 4  ;;  %v282_v56 = vadd.f32 %v281_v52, %v280_v48 }
  0x46   : > { %v273_v49 = vsel %vm215_vm0, %v262_v45, 0.0 }
  0x47   : > { %v274_v53 = vrot.slane %v273_v49, 4  ;;  %v268_v55 = vadd.f32 %v267_v50, %v266_v47  ;;  %v289_v58 = vadd.f32 %v288_v54, %v287_v51  ;;  %v283_v60 = vrot.slane %v282_v56, 2 }
  0x49   : > { %v275_v57 = vadd.f32 %v274_v53, %v273_v49  ;;  %v269_v59 = vrot.slane %v268_v55, 2  ;;  %v290_v62 = vrot.slane %v289_v58, 2  ;;  %v284_v0 = vadd.f32 %v283_v60, %v282_v56 }
  0x4b   : > { %v276_v61 = vrot.slane %v275_v57, 2  ;;  %v270_v63 = vadd.f32 %v269_v59, %v268_v55  ;;  %v291_v2 = vadd.f32 %v290_v62, %v289_v58  ;;  %v285_v4 = vrot.slane %v284_v0, 1 }
  0x4d   : > { %v277_v1 = vadd.f32 %v276_v61, %v275_v57  ;;  %v271_v3 = vrot.slane %v270_v63, 1  ;;  %v292_v6 = vrot.slane %v291_v2, 1  ;;  %v286_v8 = vadd.f32 %v285_v4, %v284_v0 }
  0x4f   : > { %v278_v5 = vrot.slane %v277_v1, 1  ;;  %v272_v7 = vadd.f32 %v271_v3, %v270_v63  ;;  %v293_v10 = vadd.f32 %v292_v6, %v291_v2  ;;  %v296_v12 = vmul.f32 0.25, %v286_v8 }
  0x51   : > { %v279_v9 = vadd.f32 %v278_v5, %v277_v1  ;;  %v294_v11 = vmul.f32 0.25, %v272_v7  ;;  %v297_v14 = vmul.f32 0.25, %v293_v10  ;;  %v300_v16 = vadd.f32 1e-05, %v296_v12 }
  0x53   : > { %v295_v13 = vmul.f32 0.25, %v279_v9  ;;  %v298_v15 = vadd.f32 1e-05, %v294_v11  ;;  %v301_v18 = vadd.f32 1e-05, %v297_v14 }
  0x55   : > { %v299_v17 = vadd.f32 1e-05, %v295_v13  ;;  %536 = vrsqrt.f32 %v298_v15 }
  0x56   : > { %538 = vrsqrt.f32 %v300_v16 }
  0x57   : > { %540 = vrsqrt.f32 %v299_v17 }
  0x58   : > { %542 = vrsqrt.f32 %v301_v18 }
  0x62   : > { %v537_v19 = vpop.eup %536 }
  0x63   : > { %v539_v20 = vpop.eup %538 }
  0x64   : > { %v541_v21 = vpop.eup %540 }
  0x65   : > { %v543_v22 = vpop.eup %542  ;;  %v310_v23 = vcombine.low %v537_v19, %v541_v21 }
  0x66   : > { %v311_v24 = vcombine.low %v539_v20, %v543_v22 }
  0x67   : > { %v314_v25 = vmul.f32 %v310_v23, %v256_v41 }
  0x68   : > { %v315_v26 = vmul.f32 %v311_v24, %v257_v42 }
  0x69   : > { %v324_v27 = vcombine.high %v314_v25, %v314_v25 }
  0x6a   : > { %v325_v28 = vcombine.high %v315_v26, %v315_v26 }
  0xa7   : > { %v320_v29 = vpop.permute.xlu0 %319 }
  0xa8   : > { %v328_v30 = vmul.f32 %v320_v29, %v314_v25  ;;  %v329_v31 = vmul.f32 %v324_v27, %v320_v29  ;;  %v330_v32 = vmul.f32 %v320_v29, %v315_v26  ;;  %v331_v33 = vmul.f32 %v325_v28, %v320_v29 }
  0xab   : > { %v336_v34 = vpop.permute.xlu0 %335 }
  0xac   : > { %v338_v35 = vadd.f32 %v336_v34, %v328_v30  ;;  %v339_v36 = vadd.f32 %v336_v34, %v329_v31  ;;  %v340_v37 = vadd.f32 %v336_v34, %v330_v32  ;;  %v341_v38 = vadd.f32 %v336_v34, %v331_v33 }
  0xae   : > { %v346_v39 = vcombine.low %v338_v35, %v339_v36  ;;  %v347_v40 = vcombine.low %v340_v37, %v341_v38 }
  0xb0   : > { %350 = vst [vmem:[%s204_s7] sm:$0xff] %v346_v39  ;;  %351 = vst [vmem:[%s204_s7 + $0x8] sm:$0xff] %v347_v40 }
  0xb1   : > { %585 = shalt.err (!%p582_p3)
}
  0xb2   : > { %s586_s28 = scalar_lea.hbm %s793_s11, 256  ;;  %s590_s30 = scalar_lea.hbm %s838_s3, 512 }
  0xb3   : > { %p587_p5 = scmp.ne.s32.totalorder %s793_s11, %s586_s28  ;;  %p591_p10 = scmp.lt.s32.totalorder %s793_s11, %s838_s3 }
  0xb4   : > { %p592_p4 = scmp.lt.s32.totalorder %s590_s30, %s586_s28 }
  0xb5   : > { %p588_p6 = pnand %p587_p5, %p728_p9 }
  0xb6   : > { %p593_p13 = por %p592_p4, %p591_p10 }
  0xb7   : > { %p589_p7 = pneg %p588_p6 }
  0xb9   : > { %p594_p8 = pnand %p593_p13, %p589_p7 }
  0xbb   : > { %597 = shalt.err (!%p594_p8)
}
  0xbc   : > { %472 = dma.vmem_to_hbm [thread:$0]  (%p728_p9), %s370_s8, 256, %s793_s11, %s353_s18  }
  0xbd PF: > { %s381_s6 = sand.u32 1, %s632_s12   ;;  %p844_p11 = scmp.ne.s32.totalorder %s842_s27, 0 }
  0xbe   : > { %p845_p12 = scmp.ge.s32.totalorder %s652_s17, 2  ;;  %s382_s24 = scalar_lea.sflag [#allocation4], %s381_s6 }
  0xc0   : > { %p479_p0 = pnand %p845_p12, %p844_p11 }
  0xc2   : > { %p480_p1 = pneg %p479_p0 }
  0xc4   : > { %627 = dma.done.wait (%p480_p1), %s382_s24, 256  }
  0xc5   : > { %629 = vsyncadd (%p480_p1), %s382_s24, 4294967040  ;;  %s19_s17 = sadd.s32 1, %s652_s17   ;;  %s846_s12 = smov %s636_s13 }
  0xc6   : > { %p16_p2 = scmp.ge.s32.totalorder %s19_s17, 4   ;;  %s847_s13 = smov %s640_s14 }
  0xc7   : > { %s848_s14 = smov %s733_s26  ;;  %s849_s15 = smov %s648_s16 }
  0xc8   : > { %s850_s16 = smov %s852_s20  ;;  %18 = sbr.rel (!%p16_p2) target bundleno = 6 (0x6), region = 77 }
  0xcd   :  { %387 = vsyncpa [#allocation3], 1 }
  0xce   :  { %389 = vsyncpa [#allocation3 + $0x1], 1 }
  0xcf   :  { %390 = vsyncpa [#allocation4], 1 }
  0xd0   :  { %392 = vsyncpa [#allocation4 + $0x1], 1 }

</bundles_post_ra>
